<compile_context>
chip_gen: v7x
topology: tpu7x:2x2x1
jax: 0.10.0
libtpu: 0.0.40
codegen_flags: <defaults>
</compile_context>

<pallas_src>
import functools

import jax
import jax.numpy as jnp
import numpy as np
from jax import lax
from jax.experimental import pallas as pl
from jax.experimental.pallas import tpu as pltpu


def _detection_kernel(grid_ref, x_ref, o_ref, *, nA, num_attrs, stride,
                      scaled_anchors):
    """One grid step = (B_TILE images) x (one anchor).

    grid_ref: (2, P) f32  [gx; gy]  -- resident across the whole grid.
    x_ref / o_ref: (B_TILE, num_attrs, P) blocks (sublane-aligned, lane-dense).
    """
    P = x_ref.shape[-1]
    s = jnp.float32(stride)

    # Single full-block load (cast to f32 inside the kernel; input may be bf16).
    v = x_ref[...].astype(jnp.float32)                      # (B, A, P)

    # Anchor size (in pixels) for this grid step: scalar select over the
    # static anchor table (scalar unit, no extra memory plumbing).
    a = pl.program_id(1)
    aw = jnp.float32(scaled_anchors[0][0] * stride)
    ah = jnp.float32(scaled_anchors[0][1] * stride)
    for n in range(1, nA):
        aw = jnp.where(a == n, jnp.float32(scaled_anchors[n][0] * stride), aw)
        ah = jnp.where(a == n, jnp.float32(scaled_anchors[n][1] * stride), ah)

    # Full-vreg transcendentals, computed ONCE over the whole block.
    # sigmoid(x) = 0.5*tanh(0.5*x) + 0.5  (single EUP op, no divide).
    sg = 0.5 * jnp.tanh(0.5 * v) + 0.5                      # (B, A, P)

    # Sublane (attribute-row) masks.
    attr = lax.broadcasted_iota(jnp.int32, (num_attrs, P), 0)
    is_cls = attr >= 5

    # Per-anchor class softmax over the sublane axis (all class rows of this
    # block belong to one anchor).  Subtract the per-position class max on
    # class rows only, then exponentiate the whole block once (exp also feeds
    # the w/h rows, where the shift is 0).
    m = jnp.max(jnp.where(is_cls, v, jnp.float32(-1e30)), axis=1, keepdims=True)
    e = jnp.exp(v - jnp.where(is_cls, m, jnp.float32(0.0)))  # (B, A, P)
    denom = jnp.sum(jnp.where(is_cls, e, jnp.float32(0.0)), axis=1, keepdims=True)
    pcls = e * (1.0 / denom)          # exact divide only on the (B,1,P) slab

    # Grid offsets (lane vectors, broadcast over batch & sublanes).
    gx = grid_ref[0:1, :]                                   # (1, P)
    gy = grid_ref[1:2, :]                                   # (1, P)

    box_xy = (sg + jnp.where(attr == 0, gx, gy)) * s        # rows 0,1
    box_wh = e * jnp.where(attr == 2, aw, ah)               # rows 2,3

    out = jnp.where(attr < 2, box_xy,
          jnp.where(attr < 4, box_wh,
          jnp.where(attr == 4, sg, pcls)))

    # One aligned, unmasked, full-tile store.
    o_ref[...] = out.astype(o_ref.dtype)


def detection_layer(x, anchors, num_classes, reso, *, lane_dense_output=False,
                    out_dtype=jnp.float32):
    """Inference-path DetectionLayer.

    Args:
      x: (bs, nA*(5+num_classes), gs, gs) raw head output (any float dtype).
    Returns:
      (bs, nA*gs*gs, 5+num_classes) detections (PyTorch layout), or the
      lane-dense (bs, nA, 5+num_classes, gs*gs) tensor if lane_dense_output.
    """
    bs, ch, gs, gs2 = x.shape
    assert gs == gs2
    nA = len(anchors)
    num_attrs = 5 + num_classes
    assert ch == nA * num_attrs
    stride = reso // gs
    P = gs * gs
    scaled_anchors = tuple(
        (float(aw) / stride, float(ah) / stride) for aw, ah in anchors)

    # Free reshape: anchor axis becomes its own array dim so every per-anchor
    # block starts at sublane 0 (works for num_attrs not divisible by 8 too).
    x4 = x.reshape(bs, nA, num_attrs, P)

    # Exact integer grid offsets (correct for non-power-of-two gs), computed
    # once on the host side of the kernel; stays resident in VMEM.
    idx = jnp.arange(P, dtype=jnp.int32)
    grid_xy = jnp.stack([(idx % gs).astype(jnp.float32),
                         (idx // gs).astype(jnp.float32)], axis=0)  # (2, P)

    # Batch-fold the grid: target ~1 MiB of input per block (keeps the kernel
    # near the HBM roofline and safely inside v7x's smaller VMEM budget).
    per_img_bytes = num_attrs * P * x.dtype.itemsize
    b_tile = int(max(1, min(bs, (1 << 20) // max(1, per_img_bytes))))
    while bs % b_tile:
        b_tile -= 1

    kernel = functools.partial(
        _detection_kernel, nA=nA, num_attrs=num_attrs, stride=float(stride),
        scaled_anchors=scaled_anchors)

    out = pl.pallas_call(
        kernel,
        out_shape=jax.ShapeDtypeStruct((bs, nA, num_attrs, P), out_dtype),
        grid=(bs // b_tile, nA),
        in_specs=[
            # Tiny grid-offset table, constant index_map -> resident in VMEM.
            pl.BlockSpec((2, P), lambda b, a: (0, 0)),
            pl.BlockSpec((b_tile, None, num_attrs, P),
                         lambda b, a: (b, a, 0, 0)),
        ],
        out_specs=pl.BlockSpec((b_tile, None, num_attrs, P),
                               lambda b, a: (b, a, 0, 0)),
        compiler_params=pltpu.CompilerParams(
            dimension_semantics=("parallel", "parallel")),
    )(grid_xy, x4)

    if lane_dense_output:
        return out  # (bs, nA, num_attrs, gs*gs) -- no extra transpose pass.

    # PyTorch module layout.  NOTE: this is a standalone XLA transpose whose
    # HBM traffic is comparable to the kernel itself; prefer
    # lane_dense_output=True if the consumer can read the lane-dense layout.
    return out.transpose(0, 1, 3, 2).reshape(bs, nA * P, num_attrs)


def _detection_reference(x, anchors, num_classes, reso):
    """Pure-JAX reference of the PyTorch inference branch."""
    bs, ch, gs, _ = x.shape
    nA = len(anchors)
    A = 5 + num_classes
    stride = reso // gs
    scaled = jnp.asarray([(aw / stride, ah / stride) for aw, ah in anchors],
                         dtype=jnp.float32)
    xv = x.reshape(bs, nA, A, gs, gs).transpose(0, 1, 3, 4, 2)  # (bs,nA,gs,gs,A)
    tx = jax.nn.sigmoid(xv[..., 0])
    ty = jax.nn.sigmoid(xv[..., 1])
    tw = xv[..., 2]
    th = xv[..., 3]
    conf = jax.nn.sigmoid(xv[..., 4])
    pcls = jax.nn.softmax(xv[..., 5:], axis=-1)
    grid_x = jnp.arange(gs, dtype=jnp.float32).reshape(1, 1, 1, gs)
    grid_y = jnp.arange(gs, dtype=jnp.float32).reshape(1, 1, gs, 1)
    aw = scaled[:, 0].reshape(1, nA, 1, 1)
    ah = scaled[:, 1].reshape(1, nA, 1, 1)
    bx = (tx + grid_x) * stride
    by = (ty + grid_y) * stride
    bw = jnp.exp(tw) * aw * stride
    bh = jnp.exp(th) * ah * stride
    det = jnp.concatenate(
        [bx[..., None], by[..., None], bw[..., None], bh[..., None],
         conf[..., None], pcls], axis=-1)
    return det.reshape(bs, nA * gs * gs, A)


if __name__ == "__main__":
    key = jax.random.PRNGKey(0)
    bs, gs, reso = 2, 16, 64
    num_classes = 3
    anchors = ((10.0, 13.0), (16.0, 30.0), (33.0, 23.0))
    nA = len(anchors)
    num_attrs = 5 + num_classes

    x = jax.random.normal(key, (bs, nA * num_attrs, gs, gs), dtype=jnp.float32)

    det = detection_layer(x, anchors, num_classes, reso)
    det = jax.block_until_ready(det)

    ref = jax.block_until_ready(_detection_reference(x, anchors, num_classes, reso))
    np.testing.assert_allclose(np.asarray(det), np.asarray(ref),
                               rtol=1e-4, atol=1e-4)
    assert det.shape == (bs, nA * gs * gs, num_attrs)

    print("KERNEL_OK")
</pallas_src>

<mosaic_0001>
module attributes {stable_mosaic.version = 11 : i64} {
  func.func @_detection_kernel(%arg0: i32, %arg1: i32, %arg2: memref<2x256xf32, #tpu.memory_space<vmem>>, %arg3: memref<2x1x8x256xf32, #tpu.memory_space<vmem>>, %arg4: memref<2x1x8x256xf32, #tpu.memory_space<vmem>>) attributes {dimension_semantics = [#tpu.dimension_semantics<parallel>, #tpu.dimension_semantics<parallel>], iteration_bounds = array<i64: 1, 3>, scalar_prefetch = 0 : i64, scratch_operands = 0 : i64, tpu.core_type = #tpu.core_type<tc>, window_params = [{pipeline_mode = #tpu.pipeline_mode<synchronous>, transform_indices = @transform_0, window_bounds = array<i64: 2, 256>}, {transform_indices = @transform_1, window_bounds = array<i64: 2, 1, 8, 256>}, {transform_indices = @transform_2, window_bounds = array<i64: 2, 1, 8, 256>}]} {
    %c0 = arith.constant 0 : index
    %c0_0 = arith.constant 0 : index
    %c0_1 = arith.constant 0 : index
    %c0_2 = arith.constant 0 : index
    %0 = vector.load %arg3[%c0, %c0_0, %c0_1, %c0_2] : memref<2x1x8x256xf32, #tpu.memory_space<vmem>>, vector<2x1x8x256xf32>
    %1 = vector.shape_cast %0 : vector<2x1x8x256xf32> to vector<2x8x256xf32>
    %c1_i32 = arith.constant 1 : i32
    %2 = arith.cmpi eq, %arg1, %c1_i32 : i32
    %cst = arith.constant 1.600000e+01 : f32
    %cst_3 = arith.constant 1.000000e+01 : f32
    %3 = arith.select %2, %cst, %cst_3 : f32
    %c1_i32_4 = arith.constant 1 : i32
    %4 = arith.cmpi eq, %arg1, %c1_i32_4 : i32
    %cst_5 = arith.constant 3.000000e+01 : f32
    %cst_6 = arith.constant 1.300000e+01 : f32
    %5 = arith.select %4, %cst_5, %cst_6 : f32
    %c2_i32 = arith.constant 2 : i32
    %6 = arith.cmpi eq, %arg1, %c2_i32 : i32
    %cst_7 = arith.constant 3.300000e+01 : f32
    %7 = arith.select %6, %cst_7, %3 : f32
    %c2_i32_8 = arith.constant 2 : i32
    %8 = arith.cmpi eq, %arg1, %c2_i32_8 : i32
    %cst_9 = arith.constant 2.300000e+01 : f32
    %9 = arith.select %8, %cst_9, %5 : f32
    %cst_10 = arith.constant 5.000000e-01 : f32
    %10 = vector.broadcast %cst_10 : f32 to vector<2x8x256xf32>
    %11 = arith.mulf %10, %1 : vector<2x8x256xf32>
    %12 = math.tanh %11 : vector<2x8x256xf32>
    %cst_11 = arith.constant 5.000000e-01 : f32
    %13 = vector.broadcast %cst_11 : f32 to vector<2x8x256xf32>
    %14 = arith.mulf %13, %12 : vector<2x8x256xf32>
    %cst_12 = arith.constant 5.000000e-01 : f32
    %15 = vector.broadcast %cst_12 : f32 to vector<2x8x256xf32>
    %16 = arith.addf %14, %15 : vector<2x8x256xf32>
    %17 = tpu.iota {dimensions = array<i32: 0>} : vector<8x256xi32>
    %c5_i32 = arith.constant 5 : i32
    %18 = vector.broadcast %c5_i32 : i32 to vector<8x256xi32>
    %19 = arith.cmpi sge, %17, %18 : vector<8x256xi32>
    %cst_13 = arith.constant -1.000000e+30 : f32
    %20 = vector.shape_cast %19 : vector<8x256xi1> to vector<1x8x256xi1>
    %21 = vector.broadcast %20 : vector<1x8x256xi1> to vector<2x8x256xi1>
    %22 = vector.broadcast %cst_13 : f32 to vector<2x8x256xf32>
    %23 = arith.select %21, %1, %22 : vector<2x8x256xi1>, vector<2x8x256xf32>
    %cst_14 = arith.constant dense<0xFF800000> : vector<2x256xf32>
    %24 = vector.multi_reduction <maximumf>, %23, %cst_14 [1] : vector<2x8x256xf32> to vector<2x256xf32>
    %25 = vector.shape_cast %24 : vector<2x256xf32> to vector<2x1x256xf32>
    %cst_15 = arith.constant 0.000000e+00 : f32
    %26 = vector.shape_cast %19 : vector<8x256xi1> to vector<1x8x256xi1>
    %27 = vector.broadcast %26 : vector<1x8x256xi1> to vector<2x8x256xi1>
    %28 = vector.shape_cast %25 : vector<2x1x256xf32> to vector<2x1x256xf32>
    %29 = vector.broadcast %28 : vector<2x1x256xf32> to vector<2x8x256xf32>
    %30 = vector.broadcast %cst_15 : f32 to vector<2x8x256xf32>
    %31 = arith.select %27, %29, %30 : vector<2x8x256xi1>, vector<2x8x256xf32>
    %32 = arith.subf %1, %31 : vector<2x8x256xf32>
    %33 = math.exp %32 : vector<2x8x256xf32>
    %cst_16 = arith.constant 0.000000e+00 : f32
    %34 = vector.shape_cast %19 : vector<8x256xi1> to vector<1x8x256xi1>
    %35 = vector.broadcast %34 : vector<1x8x256xi1> to vector<2x8x256xi1>
    %36 = vector.broadcast %cst_16 : f32 to vector<2x8x256xf32>
    %37 = arith.select %35, %33, %36 : vector<2x8x256xi1>, vector<2x8x256xf32>
    %cst_17 = arith.constant dense<0.000000e+00> : vector<2x256xf32>
    %38 = vector.multi_reduction <add>, %37, %cst_17 [1] : vector<2x8x256xf32> to vector<2x256xf32>
    %39 = vector.shape_cast %38 : vector<2x256xf32> to vector<2x1x256xf32>
    %cst_18 = arith.constant 1.000000e+00 : f32
    %40 = vector.broadcast %cst_18 : f32 to vector<2x1x256xf32>
    %41 = arith.divf %40, %39 : vector<2x1x256xf32>
    %42 = vector.broadcast %41 : vector<2x1x256xf32> to vector<2x8x256xf32>
    %43 = arith.mulf %33, %42 : vector<2x8x256xf32>
    %c0_19 = arith.constant 0 : index
    %c0_20 = arith.constant 0 : index
    %44 = vector.load %arg2[%c0_19, %c0_20] : memref<2x256xf32, #tpu.memory_space<vmem>>, vector<1x256xf32>
    %c1 = arith.constant 1 : index
    %c0_21 = arith.constant 0 : index
    %45 = vector.load %arg2[%c1, %c0_21] : memref<2x256xf32, #tpu.memory_space<vmem>>, vector<1x256xf32>
    %c0_i32 = arith.constant 0 : i32
    %46 = vector.broadcast %c0_i32 : i32 to vector<8x256xi32>
    %47 = arith.cmpi eq, %17, %46 : vector<8x256xi32>
    %48 = vector.shape_cast %44 : vector<1x256xf32> to vector<1x256xf32>
    %49 = vector.broadcast %48 : vector<1x256xf32> to vector<8x256xf32>
    %50 = vector.shape_cast %45 : vector<1x256xf32> to vector<1x256xf32>
    %51 = vector.broadcast %50 : vector<1x256xf32> to vector<8x256xf32>
    %52 = arith.select %47, %49, %51 : vector<8x256xi1>, vector<8x256xf32>
    %53 = vector.shape_cast %52 : vector<8x256xf32> to vector<1x8x256xf32>
    %54 = vector.broadcast %53 : vector<1x8x256xf32> to vector<2x8x256xf32>
    %55 = arith.addf %16, %54 : vector<2x8x256xf32>
    %cst_22 = arith.constant 4.000000e+00 : f32
    %56 = vector.broadcast %cst_22 : f32 to vector<2x8x256xf32>
    %57 = arith.mulf %55, %56 : vector<2x8x256xf32>
    %c2_i32_23 = arith.constant 2 : i32
    %58 = vector.broadcast %c2_i32_23 : i32 to vector<8x256xi32>
    %59 = arith.cmpi eq, %17, %58 : vector<8x256xi32>
    %60 = vector.broadcast %7 : f32 to vector<8x256xf32>
    %61 = vector.broadcast %9 : f32 to vector<8x256xf32>
    %62 = arith.select %59, %60, %61 : vector<8x256xi1>, vector<8x256xf32>
    %63 = vector.shape_cast %62 : vector<8x256xf32> to vector<1x8x256xf32>
    %64 = vector.broadcast %63 : vector<1x8x256xf32> to vector<2x8x256xf32>
    %65 = arith.mulf %33, %64 : vector<2x8x256xf32>
    %c2_i32_24 = arith.constant 2 : i32
    %66 = vector.broadcast %c2_i32_24 : i32 to vector<8x256xi32>
    %67 = arith.cmpi slt, %17, %66 : vector<8x256xi32>
    %c4_i32 = arith.constant 4 : i32
    %68 = vector.broadcast %c4_i32 : i32 to vector<8x256xi32>
    %69 = arith.cmpi slt, %17, %68 : vector<8x256xi32>
    %c4_i32_25 = arith.constant 4 : i32
    %70 = vector.broadcast %c4_i32_25 : i32 to vector<8x256xi32>
    %71 = arith.cmpi eq, %17, %70 : vector<8x256xi32>
    %72 = vector.shape_cast %71 : vector<8x256xi1> to vector<1x8x256xi1>
    %73 = vector.broadcast %72 : vector<1x8x256xi1> to vector<2x8x256xi1>
    %74 = arith.select %73, %16, %43 : vector<2x8x256xi1>, vector<2x8x256xf32>
    %75 = vector.shape_cast %69 : vector<8x256xi1> to vector<1x8x256xi1>
    %76 = vector.broadcast %75 : vector<1x8x256xi1> to vector<2x8x256xi1>
    %77 = arith.select %76, %65, %74 : vector<2x8x256xi1>, vector<2x8x256xf32>
    %78 = vector.shape_cast %67 : vector<8x256xi1> to vector<1x8x256xi1>
    %79 = vector.broadcast %78 : vector<1x8x256xi1> to vector<2x8x256xi1>
    %80 = arith.select %79, %57, %77 : vector<2x8x256xi1>, vector<2x8x256xf32>
    %c0_26 = arith.constant 0 : index
    %c0_27 = arith.constant 0 : index
    %c0_28 = arith.constant 0 : index
    %c0_29 = arith.constant 0 : index
    %81 = vector.load %arg4[%c0_26, %c0_27, %c0_28, %c0_29] : memref<2x1x8x256xf32, #tpu.memory_space<vmem>>, vector<2x1x8x256xf32>
    %82 = vector.shape_cast %81 : vector<2x1x8x256xf32> to vector<2x8x256xf32>
    %83 = vector.shape_cast %80 : vector<2x8x256xf32> to vector<2x1x8x256xf32>
    tpu.vector_store %arg4[%c0_26, %c0_27, %c0_28, %c0_29], %83 {strides = array<i32>} : memref<2x1x8x256xf32, #tpu.memory_space<vmem>>, vector<2x1x8x256xf32>,
    return
  }
  func.func @transform_0(%arg0: i32, %arg1: i32) -> (i32, i32) {
    %c0_i32 = arith.constant 0 : i32
    %c0_i32_0 = arith.constant 0 : i32
    %c0_i32_1 = arith.constant 0 : i32
    return %c0_i32, %c0_i32_0 : i32, i32
  }
  func.func @transform_1(%arg0: i32, %arg1: i32) -> (i32, i32, i32, i32) {
    %c0_i32 = arith.constant 0 : i32
    %c0_i32_0 = arith.constant 0 : i32
    %c0_i32_1 = arith.constant 0 : i32
    return %arg0, %arg1, %c0_i32, %c0_i32_0 : i32, i32, i32, i32
  }
  func.func @transform_2(%arg0: i32, %arg1: i32) -> (i32, i32, i32, i32) {
    %c0_i32 = arith.constant 0 : i32
    %c0_i32_0 = arith.constant 0 : i32
    %c0_i32_1 = arith.constant 0 : i32
    return %arg0, %arg1, %c0_i32, %c0_i32_0 : i32, i32, i32, i32
  }
}

</mosaic_0001>

<bundles_post_ra>
// kernel: tpu_custom_call.1
= control target key start
LH: loop header
LB: loop body
LE: loop exit
PB: predicated region body
PF: predicated region fallthrough
CT: control target
= control target key end

     0   :  { %7 = vsyncpa [#allocation3], 0  ;;  %s1106_s0 = inlined_call_operand.hbm [shape: f32[2,256], index: 0, kind: input, shape index: {}]   ;;  %s1107_s1 = inlined_call_operand.hbm [shape: f32[2,3,8,256], index: 1, kind: input, shape index: {}]   ;;  %s1108_s2 = inlined_call_operand.hbm [shape: f32[2,3,8,256], index: 2, kind: output, shape index: {}]  }
   0x1   :  { %8 = vsyncpa [#allocation6], 0 }
   0x2   :  { %10 = vsyncpa [#allocation6 + $0x1], 0 }
   0x3   :  { %11 = vsyncpa [#allocation4], 0 }
   0x4   :  { %13 = vsyncpa [#allocation4 + $0x1], 0  ;;  %s788_s9 = smov 0   ;;  %s790_s10 = smov 0  }
   0x5   :  { %s792_s11 = smov 0   ;;  %s794_s12 = smov 0  }
   0x6   :  { %s796_s13 = smov 0   ;;  %s798_s14 = smov 0  }
   0x7 LB: > { %s496_s15 = sadd.s32 4294967295, %s762_s14   ;;  %s497_s16 = sadd.s32 4294967294, %s762_s14   ;;  %s762_s14 = sphi %s798_s14, %s19_s14   ;;  %s758_s13 = sphi %s796_s13, %s1135_s13   ;;  %s754_s12 = sphi %s794_s12, %s1134_s12   ;;  %s750_s11 = sphi %s792_s11, %s1133_s11   ;;  %s746_s10 = sphi %s790_s10, %s1132_s10   ;;  %s742_s9 = sphi %s788_s9, %s1131_s9  }
   0x8   : > { %s61_s17 = sadd.s32 1, %s750_s11  ;;  %p68_p0 = scmp.ne.s32.totalorder %s750_s11, %s746_s10 }
   0x9   : > { %p69_p1 = scmp.eq.s32.totalorder %s762_s14, 0  ;;  %p74_p2 = scmp.ne.s32.totalorder %s746_s10, %s742_s9 }
   0xa   : > { %p826_p3 = scmp.eq.s32.totalorder %s496_s15, 0  ;;  %p100_p4 = scmp.eq.s32.totalorder %s496_s15, 2 }
   0xb   : > { %p830_p5 = por %p69_p1, %p68_p0  ;;  %p106_p6 = scmp.eq.s32.totalorder %s497_s16, 2 }
   0xc   : > { %s1115_s18 = scalar_select %p826_p3, 1, 0 }
   0xd   : > { %p836_p7 = por %p826_p3, %p74_p2  ;;  %p840_p8 = por %p100_p4, %p68_p0 }
   0xe   : > { %p844_p9 = por %p106_p6, %p74_p2  ;;  %p498_p10 = scmp.ge.s32.totalorder %s762_s14, 1 }
   0xf   : > { %s1117_s20 = scalar_select %p836_p7, 1, 0 }
  0x10   : > { %s1118_s21 = scalar_select %p840_p8, 1, 0 }
  0x11   : > { %s1119_s22 = scalar_select %p844_p9, 1, 0 }
  0x12   : > { %p113_p11 = scmp.lt.s32.totalorder %s762_s14, 4  ;;  %s764_s24 = smov [#allocation2]  }
  0x13   : > { %s126_s25 = sshll.u32 %s764_s24, 4  ;;  %p536_p13 = scmp.lt.s32.totalorder %s762_s14, 3  ;;  %s127_s25 = int_to_ptr.vmem [resolvable:$true] %s126_s25 }
  0x14   : > { %p850_p12 = pnand %p498_p10, %p113_p11  ;;  %s28_s28 = sadd.s32 1, %s758_s13 }
  0x15   : > { %p859_p1 = pnand %p536_p13, %p830_p5  ;;  %p870_p4 = scmp.ge.s32.totalorder %s28_s28, 3 }
  0x16   : > { %s1120_s23 = scalar_select %p850_p12, 1, 0 }
  0x17   : > { %p523_p0 = pneg %p850_p12  ;;  %s137_s30 = sand.u32 1, %s750_s11  }
  0x18   : > { %s1121_s26 = scalar_select %p859_p1, 1, 0 }
  0x19   : > { %p865_p2 = pnand %p523_p0, %p826_p3  ;;  %s618_s5 = scalar_lea.hbm %s1106_s0, 64 }
  0x1a   : > { %s1123_s29 = scalar_select %p870_p4, 1, 0 }
  0x1b   : > { %p619_p5 = scmp.ne.s32.totalorder %s1106_s0, %s618_s5  ;;  %p620_p6 = pneg %p865_p2 }
  0x1c   : > { %p625_p13 = scmp.lt.u32.totalorder %s618_s5, %s1106_s0 }
  0x1d   : > { %p621_p10 = pnand %p620_p6, %p619_p5 }
  0x1f   : > { %p622_p11 = pneg %p621_p10 }
  0x21   : > { %p627_p0 = pnand %p625_p13, %p622_p11 }
  0x23   : > { %630 = shalt.err (!%p627_p0)
}
  0x24   : > { %s631_s16 = scalar_lea.vmem %s127_s25, 64  ;;  %p639_p3 = scmp.lt.s32.totalorder %s127_s25, %s127_s25 }
  0x25   : > { %p632_p9 = scmp.ne.s32.totalorder %s127_s25, %s631_s16  ;;  %p640_p12 = scmp.lt.s32.totalorder %s631_s16, %s631_s16 }
  0x27   : > { %p634_p8 = pnand %p632_p9, %p620_p6  ;;  %p641_p1 = por %p640_p12, %p639_p3 }
  0x29   : > { %p635_p7 = pneg %p634_p8 }
  0x2b   : > { %p642_p4 = pnand %p641_p1, %p635_p7 }
  0x2d   : > { %645 = shalt.err (!%p642_p4)
}
  0x2e   : > { %526 = dma.hbm_to_vmem [thread:$0]  (!%p865_p2), %s1106_s0, 64, %s127_s25, [#allocation3]  }
  0x2f   : > { %p1124_p9 = scmp.ne.s32.totalorder %s1123_s29, 0  ;;  %s501_s3 = sshll.u32 %s137_s30, 5 }
  0x30   : > { %s513_s5 = sshll.u32 %s758_s13, 8  ;;  %s141_s8 = scalar_lea.vmem [#allocation5], %s501_s3 }
  0x31   : > { %s1137_s28 = smov (%p1124_p9, %s28_s28), 0  ;;  %s901_s7 = scalar_lea.hbm %s1107_s1, %s513_s5 }
  0x32   : > { %s57_s4 = ssub.s32 %s758_s13, %s1137_s28  ;;  %s151_s15 = sshll.u32 %s141_s8, 4  ;;  %s908_s15 = int_to_ptr.vmem [resolvable:$true] %s151_s15 }
  0x33   : > { %p59_p3 = scmp.eq.s32.totalorder %s57_s4, 0  ;;  %s910_s29 = scalar_lea.sflag [#allocation6], %s137_s30 }
  0x34   : > { %s646_s16 = scalar_lea.hbm %s901_s7, 512  ;;  %p1125_p8 = scmp.ne.s32.totalorder %s1121_s26, 0 }
  0x35   : > { %s906_s25 = scalar_select %p59_p3, %s750_s11, %s61_s17  }
  0x36   : > { %p647_p7 = scmp.ne.s32.totalorder %s901_s7, %s646_s16  ;;  %p648_p12 = pneg %p1125_p8 }
  0x37   : > { %s651_s3 = scalar_lea.hbm %s1107_s1, 1536  ;;  %p652_p4 = scmp.lt.u32.totalorder %s901_s7, %s1107_s1 }
  0x38   : > { %p649_p1 = pnand %p648_p12, %p647_p7  ;;  %p653_p5 = scmp.lt.u32.totalorder %s651_s3, %s646_s16 }
  0x39   : > { %p655_p10 = scmp.lt.u32.totalorder %s646_s16, %s901_s7 }
  0x3a   : > { %p650_p2 = pneg %p649_p1  ;;  %p654_p6 = por %p653_p5, %p652_p4 }
  0x3c   : > { %p656_p11 = por %p655_p10, %p654_p6 }
  0x3e   : > { %p657_p13 = pnand %p656_p11, %p650_p2 }
  0x40   : > { %660 = shalt.err (!%p657_p13)
}
  0x41   : > { %s661_s17 = scalar_lea.vmem %s908_s15, 512  ;;  %s765_s30 = smov [#allocation5]  }
  0x42   : > { %p662_p0 = scmp.ne.s32.totalorder %s908_s15, %s661_s17  ;;  %s666_s27 = sshll.u32 %s765_s30, 4  ;;  %s667_s27 = int_to_ptr.vmem [resolvable:$false] %s666_s27 }
  0x43   : > { %s668_s6 = scalar_lea.vmem %s667_s27, 1024  ;;  %p669_p7 = scmp.lt.s32.totalorder %s908_s15, %s667_s27 }
  0x44   : > { %p664_p9 = pnand %p662_p0, %p648_p12  ;;  %p670_p1 = scmp.lt.s32.totalorder %s668_s6, %s661_s17 }
  0x46   : > { %p665_p3 = pneg %p664_p9  ;;  %p671_p4 = por %p670_p1, %p669_p7 }
  0x48   : > { %p672_p5 = pnand %p671_p4, %p665_p3 }
  0x4a   : > { %675 = shalt.err (!%p672_p5)
}
  0x4b   : > { %s766_s8 = smov 768   ;;  %s767_s16 = smov 256  }
  0x4c   : > { %s768_s19 = smov 16   ;;  %p1126_p12 = scmp.ne.s32.totalorder %s1120_s23, 0 }
  0x4d   : > { %530 = dma.hbm_to_vmem [thread:$0]  (!%p1125_p8), %s901_s7, 512, %s908_s15, %s910_s29, %s766_s8, %s767_s16, %s768_s19  }
  0x4e   : > { %163 = sbr.rel (%p1126_p12) target bundleno = 172 (0xac), region = 28  ;;  %p1127_p2 = scmp.ne.s32.totalorder (!%p1126_p12), %s1115_s18, 0 }
  0x55   : > { %729 = dma.done.wait (%p1127_p2), [#allocation3], 64  }
  0x56   : > { %731 = vsyncadd (%p1127_p2), [#allocation3], 4294967232  ;;  %s945_s24 = sand.u32 1, %s746_s10   ;;  %p1128_p8 = scmp.ne.s32.totalorder %s1117_s20, 0 }
  0x57   : > { %s506_s3 = sshll.u32 %s945_s24, 5  ;;  %s170_s4 = scalar_lea.sflag [#allocation6], %s945_s24 }
  0x58   : > { %s173_s26 = scalar_lea.vmem [#allocation5], %s506_s3 }
  0x59   : > { %733 = dma.done.wait (%p1128_p8), %s170_s4, 512  }
  0x5a   : > { %735 = vsyncadd (%p1128_p8), %s170_s4, 4294966784  ;;  %v222_v0 = vlaneseq  ;;  %v196_v2 = vld [vmem:[%s173_s26] sm:$0xff]  ;;  %v197_v3 = vld [vmem:[%s173_s26 + $0x8] sm:$0xff]  ;;  %p200_p6 = scmp.eq.s32.totalorder %s754_s12, 1  ;;  %p203_p10 = scmp.eq.s32.totalorder %s754_s12, 2 }
  0x5b   : > { %v198_v7 = vld [vmem:[%s173_s26 + $0x10] sm:$0xff]  ;;  %v199_v9 = vld [vmem:[%s173_s26 + $0x18] sm:$0xff]  ;;  %v206_v46 = vmul.f32 0.5, %v196_v2  ;;  %v207_v47 = vmul.f32 0.5, %v197_v3  ;;  %s193_s23 = scalar_lea.vmem [#allocation7], %s506_s3  ;;  %s514_s15 = sshll.u32 %s754_s12, 8 }
  0x5c   : > { %v955_v1 = vshrl.u32 %v222_v0, 7  ;;  %v208_v49 = vmul.f32 0.5, %v198_v7  ;;  %v209_v54 = vmul.f32 0.5, %v199_v9  ;;  %s201_s18 = scalar_select %p200_p6, 16.0, 10.0 }
  0x5d   : > { %s202_s20 = scalar_select %p200_p6, 30.0, 13.0 }
  0x5e   : > { %vm224_vm0 = vcmp.ge.s32.totalorder %v955_v1, 5  ;;  %s1139_s18 = smov (%p203_p10, %s201_s18), 33.0  ;;  %vm314_vm1 = vcmp.eq.s32.totalorder %v955_v1, 0  ;;  %vm347_vm2 = vcmp.eq.s32.totalorder %v955_v1, 2  ;;  %vm356_vm3 = vcmp.lt.s32.totalorder %v955_v1, 4  ;;  %s397_s7 = sshll.u32 %s193_s23, 4  ;;  %s1043_s7 = int_to_ptr.vmem [resolvable:$true] %s397_s7 }
  0x5f   : > { %v227_v4 = vsel %vm224_vm0, %v196_v2, -1e+30  ;;  %v228_v6 = vsel %vm224_vm0, %v197_v3, -1e+30  ;;  %v229_v12 = vsel %vm224_vm0, %v198_v7, -1e+30  ;;  %s1054_s5 = scalar_lea.hbm %s1108_s2, %s514_s15 }
  0x60   : > { %v231_v5 = vrot.slane %v227_v4, 4  ;;  %v237_v8 = vrot.slane %v228_v6, 4  ;;  %v243_v14 = vrot.slane %v229_v12, 4  ;;  %v230_v15 = vsel %vm224_vm0, %v199_v9, -1e+30  ;;  %s1141_s20 = smov (%p203_p10, %s202_s20), 23.0 }
  0x61   : > { %v249_v17 = vrot.slane %v230_v15, 4  ;;  %vm357_vm4 = vcmp.eq.s32.totalorder %v955_v1, 4  ;;  %vm355_vm5 = vcmp.lt.s32.totalorder %v955_v1, 2  ;;  %s381_s17 = scalar_lea.sflag [#allocation4], %s945_s24  ;;  %s676_s30 = scalar_lea.vmem %s1043_s7, 512 }
  0x62   : > { %v232_v10 = vmax.f32 %v227_v4, %v231_v5  ;;  %v238_v11 = vmax.f32 %v228_v6, %v237_v8  ;;  %v244_v19 = vmax.f32 %v229_v12, %v243_v14  ;;  %v311_v5 = vld [vmem:[#allocation2] ss:$2 sm:$0x3]  ;;  %v318_v6 = vsub.s32 0, %v955_v1  ;;  %p677_p11 = scmp.ne.s32.totalorder %s1043_s7, %s676_s30  ;;  %p1129_p13 = scmp.ne.s32.totalorder %s1118_s21, 0 }
  0x63   : > { %v250_v21 = vmax.f32 %v230_v15, %v249_v17  ;;  %v322_v15 = vsub.s32 1, %v955_v1  ;;  %s769_s27 = smov [#allocation7]  }
  0x64   : > { %v233_v13 = vrot.slane %v232_v10, 2  ;;  %v239_v16 = vrot.slane %v238_v11, 2  ;;  %v245_v23 = vrot.slane %v244_v19, 2  ;;  %p678_p0 = pnand %p677_p11, %p1129_p13  ;;  %s680_s6 = sshll.u32 %s769_s27, 4  ;;  %s681_s6 = int_to_ptr.vmem [resolvable:$false] %s680_s6 }
  0x65   : > { %v251_v25 = vrot.slane %v250_v21, 2  ;;  %s682_s8 = scalar_lea.vmem %s681_s6, 1024  ;;  %p683_p3 = scmp.lt.s32.totalorder %s1043_s7, %s681_s6 }
  0x66   : > { %v234_v18 = vmax.f32 %v232_v10, %v233_v13  ;;  %v240_v20 = vmax.f32 %v238_v11, %v239_v16  ;;  %v246_v27 = vmax.f32 %v244_v19, %v245_v23  ;;  %v313_v10 = vld [vmem:[#allocation2 + $0x1] ss:$2 sm:$0x3]  ;;  %p679_p9 = pneg %p678_p0  ;;  %p684_p7 = scmp.lt.s32.totalorder %s682_s8, %s676_s30 }
  0x67   : > { %v252_v29 = vmax.f32 %v250_v21, %v251_v25  ;;  %v330_v21 = vrot.slane %v313_v10, %v318_v6 }
  0x68   : > { %v235_v22 = vrot.slane %v234_v18, 1  ;;  %v241_v24 = vrot.slane %v240_v20, 1  ;;  %v247_v31 = vrot.slane %v246_v27, 1  ;;  %p685_p1 = por %p684_p7, %p683_p3 }
  0x69   : > { %v253_v34 = vrot.slane %v252_v29, 1 }
  0x6a   : > { %v236_v26 = vmax.f32 %v234_v18, %v235_v22  ;;  %v242_v28 = vmax.f32 %v240_v20, %v241_v24  ;;  %v248_v36 = vmax.f32 %v246_v27, %v247_v31  ;;  %v319_v20 = vrot.slane %v311_v5, %v318_v6  ;;  %p686_p4 = pnand %p685_p1, %p679_p9 }
  0x6b   : > { %v254_v38 = vmax.f32 %v252_v29, %v253_v34  ;;  %v323_v27 = vrot.slane %v311_v5, %v322_v15  ;;  %v349_v34 = vstv %s1141_s20 }
  0x6c   : > { %v255_v30 = vsel %vm224_vm0, %v236_v26, 0.0  ;;  %v256_v33 = vsel %vm224_vm0, %v242_v28, 0.0  ;;  %v257_v40 = vsel %vm224_vm0, %v248_v36, 0.0  ;;  %v334_v28 = vrot.slane %v313_v10, %v322_v15 }
  0x6d   : > { %v259_v32 = vsub.f32 %v196_v2, %v255_v30  ;;  %v260_v35 = vsub.f32 %v197_v3, %v256_v33  ;;  %v261_v41 = vsub.f32 %v198_v7, %v257_v40  ;;  %v258_v42 = vsel %vm224_vm0, %v254_v38, 0.0 }
  0x6e   : > { %v262_v44 = vsub.f32 %v199_v9, %v258_v42  ;;  %v348_v33 = vstv %s1139_s18  ;;  %v337_v36 = vsel %vm314_vm1, %v319_v20, %v330_v21 }
  0x6f   : > { %v263_v37 = vmul.f32 1.442695, %v259_v32  ;;  %v265_v39 = vmul.f32 1.442695, %v260_v35  ;;  %v267_v43 = vmul.f32 1.442695, %v261_v41  ;;  %v350_v42 = vsel %vm347_vm2, %v348_v33, %v349_v34 }
  0x70   : > { %v269_v45 = vmul.f32 1.442695, %v262_v44 }
  0x71   : > { %594 = vpow2.f32 %v263_v37 }
  0x72   : > { %596 = vpow2.f32 %v265_v39  ;;  %v338_v39 = vsel %vm314_vm1, %v323_v27, %v334_v28 }
  0x73   : > { %598 = vpow2.f32 %v267_v43 }
  0x74   : > { %600 = vpow2.f32 %v269_v45 }
  0x75   : > { %602 = vtanh.f32 %v206_v46 }
  0x76   : > { %604 = vtanh.f32 %v207_v47 }
  0x77   : > { %606 = vtanh.f32 %v208_v49 }
  0x78   : > { %608 = vtanh.f32 %v209_v54 }
  0x7b   : > { %v974_v48 = vpop.eup %594 }
  0x7c   : > { %v976_v50 = vpop.eup %596  ;;  %v271_v51 = vsel %vm224_vm0, %v974_v48, 0.0  ;;  %v351_v47 = vmul.f32 %v974_v48, %v350_v42 }
  0x7d   : > { %v275_v52 = vrot.slane %v271_v51, 4  ;;  %v272_v53 = vsel %vm224_vm0, %v976_v50, 0.0  ;;  %v984_v56 = vpop.eup %598 }
  0x7e   : > { %v281_v55 = vrot.slane %v272_v53, 4  ;;  %v273_v59 = vsel %vm224_vm0, %v984_v56, 0.0  ;;  %v990_v60 = vpop.eup %600 }
  0x7f   : > { %v276_v57 = vadd.f32 %v275_v52, %v271_v51  ;;  %v287_v62 = vrot.slane %v273_v59, 4  ;;  %v274_v0 = vsel %vm224_vm0, %v990_v60, 0.0  ;;  %v603_v8 = vpop.eup %602  ;;  %v354_v6 = vmul.f32 %v990_v60, %v350_v42 }
  0x80   : > { %v282_v58 = vadd.f32 %v281_v55, %v272_v53  ;;  %v293_v4 = vrot.slane %v274_v0, 4  ;;  %v605_v13 = vpop.eup %604  ;;  %v214_v19 = vmul.f32 0.5, %v603_v8  ;;  %v352_v53 = vmul.f32 %v976_v50, %v350_v42 }
  0x81   : > { %v277_v61 = vrot.slane %v276_v57, 2  ;;  %v288_v3 = vadd.f32 %v287_v62, %v273_v59  ;;  %v607_v23 = vpop.eup %606  ;;  %v215_v24 = vmul.f32 0.5, %v605_v13 }
  0x82   : > { %v283_v63 = vrot.slane %v282_v58, 2  ;;  %v294_v12 = vadd.f32 %v293_v4, %v274_v0  ;;  %v609_v29 = vpop.eup %608  ;;  %v218_v32 = vadd.f32 0.5, %v214_v19  ;;  %v216_v35 = vmul.f32 0.5, %v607_v23 }
  0x83   : > { %v278_v2 = vadd.f32 %v277_v61, %v276_v57  ;;  %v289_v11 = vrot.slane %v288_v3, 2  ;;  %v219_v37 = vadd.f32 0.5, %v215_v24  ;;  %v217_v40 = vmul.f32 0.5, %v609_v29 }
  0x84   : > { %v284_v7 = vadd.f32 %v283_v63, %v282_v58  ;;  %v295_v18 = vrot.slane %v294_v12, 2  ;;  %v339_v41 = vadd.f32 %v337_v36, %v218_v32  ;;  %v220_v43 = vadd.f32 0.5, %v216_v35 }
  0x85   : > { %v279_v9 = vrot.slane %v278_v2, 1  ;;  %v290_v17 = vadd.f32 %v289_v11, %v288_v3  ;;  %v340_v44 = vadd.f32 %v338_v39, %v219_v37  ;;  %v221_v45 = vadd.f32 0.5, %v217_v40 }
  0x86   : > { %v285_v14 = vrot.slane %v284_v7, 1  ;;  %v296_v26 = vadd.f32 %v295_v18, %v294_v12  ;;  %v343_v52 = vmul.f32 4.0, %v339_v41  ;;  %v341_v54 = vadd.f32 %v337_v36, %v220_v43 }
  0x87   : > { %v280_v16 = vadd.f32 %v279_v9, %v278_v2  ;;  %v291_v25 = vrot.slane %v290_v17, 1  ;;  %v344_v57 = vmul.f32 4.0, %v340_v44  ;;  %v342_v59 = vadd.f32 %v338_v39, %v221_v45 }
  0x88   : > { %v286_v22 = vadd.f32 %v285_v14, %v284_v7  ;;  %v297_v31 = vrot.slane %v296_v26, 1  ;;  %v353_v63 = vmul.f32 %v984_v56, %v350_v42  ;;  %v345_v3 = vmul.f32 4.0, %v341_v54 }
  0x89   : > { %610 = vrcp.f32 %v280_v16  ;;  %v292_v30 = vadd.f32 %v291_v25, %v290_v17  ;;  %v346_v9 = vmul.f32 4.0, %v342_v59 }
  0x8a   : > { %612 = vrcp.f32 %v286_v22  ;;  %v298_v38 = vadd.f32 %v297_v31, %v296_v26 }
  0x8b   : > { %614 = vrcp.f32 %v292_v30 }
  0x8c   : > { %616 = vrcp.f32 %v298_v38 }
  0x93   : > { %v611_v46 = vpop.eup %610 }
  0x94   : > { %v613_v49 = vpop.eup %612  ;;  %v307_v51 = vmul.f32 %v611_v46, %v974_v48 }
  0x95   : > { %v308_v55 = vmul.f32 %v613_v49, %v976_v50  ;;  %v615_v61 = vpop.eup %614 }
  0x96   : > { %v360_v58 = vsel %vm357_vm4, %v218_v32, %v307_v51  ;;  %v309_v2 = vmul.f32 %v615_v61, %v984_v56  ;;  %v617_v4 = vpop.eup %616 }
  0x97   : > { %v366_v62 = vsel %vm356_vm3, %v351_v47, %v360_v58  ;;  %v361_v48 = vsel %vm357_vm4, %v219_v37, %v308_v55  ;;  %v310_v8 = vmul.f32 %v617_v4, %v990_v60 }
  0x98   : > { %v372_v0 = vsel %vm355_vm5, %v343_v52, %v366_v62  ;;  %v367_v50 = vsel %vm356_vm3, %v352_v53, %v361_v48  ;;  %v362_v7 = vsel %vm357_vm4, %v220_v43, %v309_v2 }
  0x99   : > { %376 = vst [vmem:[%s193_s23] sm:$0xff] %v372_v0  ;;  %v373_v5 = vsel %vm355_vm5, %v344_v57, %v367_v50  ;;  %v368_v56 = vsel %vm356_vm3, %v353_v63, %v362_v7  ;;  %v363_v11 = vsel %vm357_vm4, %v221_v45, %v310_v8 }
  0x9a   : > { %377 = vst [vmem:[%s193_s23 + $0x8] sm:$0xff] %v373_v5  ;;  %v374_v10 = vsel %vm355_vm5, %v345_v3, %v368_v56  ;;  %v369_v60 = vsel %vm356_vm3, %v354_v6, %v363_v11 }
  0x9b   : > { %378 = vst [vmem:[%s193_s23 + $0x10] sm:$0xff] %v374_v10  ;;  %v375_v12 = vsel %vm355_vm5, %v346_v9, %v369_v60 }
  0x9c   : > { %379 = vst [vmem:[%s193_s23 + $0x18] sm:$0xff] %v375_v12 }
  0x9d   : > { %689 = shalt.err (!%p686_p4)
}
  0x9e   : > { %s690_s16 = scalar_lea.hbm %s1054_s5, 512  ;;  %s694_s4 = scalar_lea.hbm %s1108_s2, 1536 }
  0x9f   : > { %p691_p5 = scmp.ne.s32.totalorder %s1054_s5, %s690_s16  ;;  %p695_p8 = scmp.lt.u32.totalorder %s1054_s5, %s1108_s2 }
  0xa0   : > { %p696_p6 = scmp.lt.u32.totalorder %s694_s4, %s690_s16  ;;  %p698_p11 = scmp.lt.u32.totalorder %s690_s16, %s1054_s5 }
  0xa1   : > { %p692_p12 = pnand %p691_p5, %p1129_p13 }
  0xa2   : > { %p697_p10 = por %p696_p6, %p695_p8 }
  0xa3   : > { %p693_p2 = pneg %p692_p12 }
  0xa4   : > { %p699_p0 = por %p698_p11, %p697_p10 }
  0xa6   : > { %p700_p9 = pnand %p699_p0, %p693_p2 }
  0xa8   : > { %703 = shalt.err (!%p700_p9)
}
  0xa9   : > { %s770_s20 = smov 256   ;;  %s771_s23 = smov 768  }
  0xaa   : > { %s772_s15 = smov 16  }
  0xab   : > { %521 = dma.vmem_to_hbm [thread:$0]  (%p1129_p13), %s1043_s7, 512, %s1054_s5, %s381_s17, %s770_s20, %s771_s23, %s772_s15  }
  0xac PF: > { %p538_p3 = scmp.ge.s32.totalorder %s762_s14, 2  ;;  %s412_s12 = sand.u32 1, %s742_s9  }
  0xad   : > { %p1130_p7 = scmp.ne.s32.totalorder %s1119_s22, 0  ;;  %s413_s29 = scalar_lea.sflag [#allocation4], %s412_s12 }
  0xaf   : > { %p532_p1 = pnand %p538_p3, %p1130_p7 }
  0xb1   : > { %737 = dma.done.wait (!%p532_p1), %s413_s29, 512  }
  0xb2   : > { %739 = vsyncadd (!%p532_p1), %s413_s29, 4294966784  ;;  %s19_s14 = sadd.s32 1, %s762_s14   ;;  %s1131_s9 = smov %s746_s10 }
  0xb3   : > { %p16_p4 = scmp.ge.s32.totalorder %s19_s14, 5   ;;  %s1132_s10 = smov %s750_s11 }
  0xb4   : > { %s1133_s11 = smov %s906_s25  ;;  %s1134_s12 = smov %s758_s13 }
  0xb5   : > { %s1135_s13 = smov %s1137_s28  ;;  %18 = sbr.rel (!%p16_p4) target bundleno = 7 (0x7), region = 79 }
  0xbc   :  { %418 = vsyncpa [#allocation3], 1 }
  0xbd   :  { %420 = vsyncpa [#allocation3 + $0x1], 1 }
  0xbe   :  { %421 = vsyncpa [#allocation6], 1 }
  0xbf   :  { %423 = vsyncpa [#allocation6 + $0x1], 1 }
  0xc0   :  { %424 = vsyncpa [#allocation4], 1 }
  0xc1   :  { %426 = vsyncpa [#allocation4 + $0x1], 1 }

</bundles_post_ra>
